<compile_context>
chip_gen: v5e
topology: v5e:2x2
jax: 0.10.0
libtpu: 0.0.40
codegen_flags: <defaults>
</compile_context>

<pallas_src>
import functools

import jax
import jax.numpy as jnp
import numpy as np
from jax.experimental import pallas as pl
from jax.experimental.pallas import tpu as pltpu

_SUBLANE = 8  # channel dims padded to this so every slab piece is tile-aligned


def _round_up(v, m):
    return (v + m - 1) // m * m


# ----------------------------------------------------------------------------
# In-kernel helpers
# ----------------------------------------------------------------------------
def _mm(a, b, dt):
    """MXU matmul with optional bf16 operand cast (f32 accumulation)."""
    if dt != jnp.float32:
        a = a.astype(dt)
        b = b.astype(dt)
    return jnp.dot(a, b, preferred_element_type=jnp.float32)


def _tap_slab(v, w, mask_slab):
    """Build the 9-tap slab (9*C_pad, L) of a 3x3/pad-1 conv from a
    channel-major value v (C_pad, L) with lane rolls + precomputed masks."""
    taps = []
    for dy in (-1, 0, 1):
        for dx in (-1, 0, 1):
            d = dy * w + dx
            taps.append(jnp.roll(v, -d, axis=1) if d else v)
    return jnp.concatenate(taps, axis=0) * mask_slab


# ----------------------------------------------------------------------------
# Fused kernel: whole BasicBlockDec forward, grid over the batch dimension
# ----------------------------------------------------------------------------
def _basic_block_dec_kernel(*refs, n_img, h, w, stride, cpad, ppad, eps, mm_dtype):
    hw = h * w
    if stride == 1:
        (x_ref, msk_ref, w2_ref, g2_ref, b2_ref,
         w1_ref, g1_ref, b1_ref, out_ref, hpre, xres) = refs
    else:
        (x_ref, msk_ref, wtop_ref, g2_ref, b2_ref,
         w1p_ref, c1b_ref, g1_ref, b1_ref, scb_ref, gsc_ref, bsc_ref,
         out_ref, hpre, scpre) = refs

    n = pl.program_id(0)
    off = pl.multiple_of(n * hw, 128)          # hw is a multiple of 128

    msk = msk_ref[...]                         # (9*cpad, hw), resident
    x_n = x_ref[0]                             # (cpad, hw) current image

    # ---- per-image step: conv2 (+ shortcut phase-conv for stride != 1) -----
    slab = _tap_slab(x_n, w, msk)              # (9*cpad, hw)
    if stride == 1:
        c2 = _mm(w2_ref[...], slab, mm_dtype)              # (cpad, hw)
        hpre[:, pl.ds(off, hw)] = c2
        xres[:, pl.ds(off, hw)] = x_n                       # identity shortcut
    else:
        # conv2 and the shortcut's phase-decomposed conv share one weight push.
        y = _mm(wtop_ref[...], slab, mm_dtype)              # (cpad + s2*ppad, hw)
        hpre[:, pl.ds(off, hw)] = y[:cpad, :]
        scpre[:, pl.ds(off, hw)] = y[cpad:, :] + scb_ref[...]

    # ---- finalize on the last grid step (needs full-batch BN statistics) ---
    @pl.when(n == n_img - 1)
    def _finalize():
        nhw = n_img * hw

        # bn2 (one-pass batch stats) + ReLU on the resident conv2 output
        hp = hpre[...]                                      # (cpad, N*hw)
        cnt2 = float(nhw)
        mean2 = jnp.sum(hp, axis=1, keepdims=True) / cnt2
        var2 = jnp.sum(hp * hp, axis=1, keepdims=True) / cnt2 - mean2 * mean2
        inv2 = jax.lax.rsqrt(var2 + eps)
        a2 = g2_ref[...] * inv2
        hh = jnp.maximum(hp * a2 + (b2_ref[...] - mean2 * a2), 0.0)

        # batched conv1 over ALL images (lanes = N*hw)
        bmsk = jnp.concatenate([msk] * n_img, axis=1)       # (9*cpad, N*hw)
        slab_h = _tap_slab(hh, w, bmsk)

        if stride == 1:
            o = _mm(w1_ref[...], slab_h, mm_dtype)          # (ppad, N*hw)
            cnt1 = float(nhw)
            mean1 = jnp.sum(o, axis=1, keepdims=True) / cnt1
            var1 = jnp.sum(o * o, axis=1, keepdims=True) / cnt1 - mean1 * mean1
            inv1 = jax.lax.rsqrt(var1 + eps)
            a1 = g1_ref[...] * inv1
            o_bn = o * a1 + (b1_ref[...] - mean1 * a1)
            out_ref[...] = jnp.maximum(o_bn + xres[...], 0.0)
        else:
            s2 = stride * stride
            o = _mm(w1p_ref[...], slab_h, mm_dtype) + c1b_ref[...]   # (s2*ppad, N*hw)
            sc = scpre[...]                                          # (s2*ppad, N*hw)
            cnt1 = float(nhw * s2)

            def ch_stats(yv):
                # per-channel stats: lane reduce, then sum the s2 phase blocks
                ls = jnp.sum(yv, axis=1, keepdims=True)              # (s2*ppad, 1)
                lq = jnp.sum(yv * yv, axis=1, keepdims=True)
                cs = sum(ls[p * ppad:(p + 1) * ppad, :] for p in range(s2))
                cq = sum(lq[p * ppad:(p + 1) * ppad, :] for p in range(s2))
                mean = cs / cnt1
                var = cq / cnt1 - mean * mean
                return mean, jax.lax.rsqrt(var + eps)

            def tile_ch(v):                                          # (ppad,1)->(s2*ppad,1)
                return jnp.concatenate([v] * s2, axis=0)

            m1, i1 = ch_stats(o)
            a1 = g1_ref[...] * i1
            o_bn = o * tile_ch(a1) + tile_ch(b1_ref[...] - m1 * a1)

            msc, isc = ch_stats(sc)
            asc = gsc_ref[...] * isc
            sc_bn = sc * tile_ch(asc) + tile_ch(bsc_ref[...] - msc * asc)

            out_ref[...] = jnp.maximum(o_bn + sc_bn, 0.0)


# ----------------------------------------------------------------------------
# Wrapper: parameter packing + single pallas_call + output unpacking
# ----------------------------------------------------------------------------
def _wmat(wt, kpad, opad):
    """(Cout, Cin, 3, 3) -> (opad, 9*kpad); column = (ky*3 + kx)*kpad + ci."""
    co, ci = wt.shape[0], wt.shape[1]
    wv = jnp.transpose(wt, (0, 2, 3, 1)).astype(jnp.float32)     # (co, 3, 3, ci)
    wv = jnp.pad(wv, ((0, opad - co), (0, 0), (0, 0), (0, kpad - ci)))
    return wv.reshape(opad, 9 * kpad)


def _phase_wmat(wt, s, kpad, opad):
    """Fold nearest-upsample-by-s into the 3x3 conv weights (sub-pixel conv).

    Returns (s*s*opad, 9*kpad); row block p = a*s + b is output phase (a, b),
    columns follow the same (tap, ci) ordering as the low-res tap slab."""
    co, ci = wt.shape[0], wt.shape[1]
    wt = wt.astype(jnp.float32)
    blocks = []
    for a in range(s):
        for b in range(s):
            acc = jnp.zeros((opad, 9, kpad), jnp.float32)
            for dy in (-1, 0, 1):
                for dx in (-1, 0, 1):
                    ry = (a + dy) // s          # source row shift in {-1,0,1}
                    rx = (b + dx) // s
                    tap = (ry + 1) * 3 + (rx + 1)
                    acc = acc.at[:co, tap, :ci].add(wt[:, :, dy + 1, dx + 1])
            blocks.append(acc.reshape(opad, 9 * kpad))
    return jnp.concatenate(blocks, axis=0)


def _cvec(v, pad):
    vv = v.reshape(-1, 1).astype(jnp.float32)
    return jnp.pad(vv, ((0, pad - vv.shape[0]), (0, 0)))


def _mask_slab(h, w, cpad):
    """(9*cpad, h*w) f32 validity masks for the 9 taps of a 3x3/pad-1 conv,
    each tap replicated over the cpad channel rows (host-side, one-time)."""
    flat = np.arange(h * w)
    row, col = flat // w, flat % w
    pieces = []
    for dy in (-1, 0, 1):
        for dx in (-1, 0, 1):
            m = ((row + dy >= 0) & (row + dy < h)
                 & (col + dx >= 0) & (col + dx < w)).astype(np.float32)
            pieces.append(np.broadcast_to(m, (cpad, h * w)))
    return jnp.asarray(np.concatenate(pieces, axis=0))


def basic_block_dec(x_nchw, params, stride, eps=1e-5, matmul_dtype=jnp.float32):
    """Forward pass of BasicBlockDec.  Input/output are NCHW like PyTorch."""
    n, cin, h, w = x_nchw.shape
    planes = cin // stride
    hw = h * w
    # TODO(synk): support hw not a multiple of 128 (needs unaligned scratch stores).
    assert hw % 128 == 0, "flattened spatial dim must be a multiple of 128"
    cpad = _round_up(cin, _SUBLANE)
    ppad = _round_up(planes, _SUBLANE)
    s2 = stride * stride

    # NCHW -> (N, C_pad, H*W): free reshape + channel pad (wrapper / XLA side).
    x3 = x_nchw.astype(jnp.float32).reshape(n, cin, hw)
    x3 = jnp.pad(x3, ((0, 0), (0, cpad - cin), (0, 0)))
    msk = _mask_slab(h, w, cpad)

    if stride == 1:
        inputs = [x3, msk,
                  _wmat(params["conv2_w"], cpad, cpad),
                  _cvec(params["bn2_g"], cpad), _cvec(params["bn2_b"], cpad),
                  _wmat(params["conv1_w"], cpad, ppad),
                  _cvec(params["bn1_g"], ppad), _cvec(params["bn1_b"], ppad)]
        out_rows = ppad
        scratch = [pltpu.VMEM((cpad, n * hw), jnp.float32),   # conv2 pre-BN
                   pltpu.VMEM((cpad, n * hw), jnp.float32)]   # identity shortcut
    else:
        w2m = _wmat(params["conv2_w"], cpad, cpad)
        wscm = _phase_wmat(params["sc_conv_w"], stride, cpad, ppad)
        wtop = jnp.concatenate([w2m, wscm], axis=0)           # one weight push/step
        c1b = jnp.concatenate([_cvec(params["conv1_b"], ppad)] * s2, axis=0)
        scb = jnp.concatenate([_cvec(params["sc_conv_b"], ppad)] * s2, axis=0)
        inputs = [x3, msk, wtop,
                  _cvec(params["bn2_g"], cpad), _cvec(params["bn2_b"], cpad),
                  _phase_wmat(params["conv1_w"], stride, cpad, ppad),
                  c1b,
                  _cvec(params["bn1_g"], ppad), _cvec(params["bn1_b"], ppad),
                  scb,
                  _cvec(params["sc_bn_g"], ppad), _cvec(params["sc_bn_b"], ppad)]
        out_rows = s2 * ppad
        scratch = [pltpu.VMEM((cpad, n * hw), jnp.float32),        # conv2 pre-BN
                   pltpu.VMEM((s2 * ppad, n * hw), jnp.float32)]   # shortcut pre-BN

    def resident(shape):
        nd = len(shape)
        return pl.BlockSpec(shape, lambda i, _nd=nd: (0,) * _nd)

    in_specs = ([pl.BlockSpec((1, cpad, hw), lambda i: (i, 0, 0))]  # streamed x tile
                + [resident(t.shape) for t in inputs[1:]])          # resident params

    kernel = functools.partial(_basic_block_dec_kernel,
                               n_img=n, h=h, w=w, stride=stride,
                               cpad=cpad, ppad=ppad, eps=eps,
                               mm_dtype=matmul_dtype)

    # VMEM budget derived from the actual resident set (x tiles, resident
    # params, scratch, resident output, finalize slab + temporaries), with 2x
    # margin.  Must stay well under 64 MiB on v7x -- see TODO at the top for
    # the streaming re-tile needed at large N*H*W.
    act_lanes = n * hw
    scr_rows = cpad + (cpad if stride == 1 else s2 * ppad)
    est = 4 * (2 * cpad * hw
               + 2 * sum(int(np.prod(t.shape)) for t in inputs[1:])
               + 2 * out_rows * act_lanes
               + scr_rows * act_lanes
               + (2 * 9 * cpad + 4 * max(cpad, out_rows)) * act_lanes)
    vmem_limit = int(max(2 * est, 16 * 1024 * 1024))

    out = pl.pallas_call(
        kernel,
        out_shape=jax.ShapeDtypeStruct((out_rows, n * hw), jnp.float32),
        grid=(n,),
        in_specs=in_specs,
        out_specs=resident((out_rows, n * hw)),
        scratch_shapes=scratch,
        compiler_params=pltpu.CompilerParams(
            dimension_semantics=("arbitrary",),   # BN batch stats couple the steps
            vmem_limit_bytes=vmem_limit),
    )(*inputs)

    # Wrapper-side (XLA/HBM) unpacking: channel un-pad + pixel shuffle.
    if stride == 1:
        out = out.reshape(ppad, n, h, w).transpose(1, 0, 2, 3)[:, :planes]
    else:
        out = out.reshape(stride, stride, ppad, n, h, w)
        out = out.transpose(3, 2, 4, 0, 5, 1).reshape(n, ppad, h * stride, w * stride)
        out = out[:, :planes]
    return out


# ----------------------------------------------------------------------------
# Pure-JAX reference (correctness check), NCHW throughout
# ----------------------------------------------------------------------------
def _conv_ref(x, wt, bias=None):
    y = jax.lax.conv_general_dilated(
        x, wt, window_strides=(1, 1), padding=((1, 1), (1, 1)),
        dimension_numbers=("NCHW", "OIHW", "NCHW"))
    if bias is not None:
        y = y + bias[None, :, None, None]
    return y


def _bn_ref(y, g, b, eps=1e-5):
    mean = jnp.mean(y, axis=(0, 2, 3), keepdims=True)
    var = jnp.mean((y - mean) ** 2, axis=(0, 2, 3), keepdims=True)
    return ((y - mean) * jax.lax.rsqrt(var + eps) * g[None, :, None, None]
            + b[None, :, None, None])


def reference_forward(x, p, stride):
    x = x.astype(jnp.float32)
    h = jnp.maximum(_bn_ref(_conv_ref(x, p["conv2_w"]), p["bn2_g"], p["bn2_b"]), 0.0)
    if stride == 1:
        o = _bn_ref(_conv_ref(h, p["conv1_w"]), p["bn1_g"], p["bn1_b"])
        sc = x
    else:
        up = lambda t: jnp.repeat(jnp.repeat(t, stride, axis=2), stride, axis=3)
        o = _bn_ref(_conv_ref(up(h), p["conv1_w"], p["conv1_b"]),
                    p["bn1_g"], p["bn1_b"])
        sc = _bn_ref(_conv_ref(up(x), p["sc_conv_w"], p["sc_conv_b"]),
                     p["sc_bn_g"], p["sc_bn_b"])
    return jnp.maximum(o + sc, 0.0)


# ----------------------------------------------------------------------------
# Main
# ----------------------------------------------------------------------------
if __name__ == "__main__":
    key = jax.random.PRNGKey(0)
    ks = jax.random.split(key, 16)
    N, C, H, W = 2, 4, 16, 16
    x = jax.random.normal(ks[0], (N, C, H, W), jnp.float32)

    def init_params(stride):
        planes = C // stride
        p = {
            "conv2_w": 0.2 * jax.random.normal(ks[1], (C, C, 3, 3), jnp.float32),
            "bn2_g": 1.0 + 0.1 * jax.random.normal(ks[2], (C,), jnp.float32),
            "bn2_b": 0.1 * jax.random.normal(ks[3], (C,), jnp.float32),
            "conv1_w": 0.2 * jax.random.normal(ks[4], (planes, C, 3, 3), jnp.float32),
            "bn1_g": 1.0 + 0.1 * jax.random.normal(ks[5], (planes,), jnp.float32),
            "bn1_b": 0.1 * jax.random.normal(ks[6], (planes,), jnp.float32),
        }
        if stride != 1:
            p.update({
                "conv1_b": 0.1 * jax.random.normal(ks[7], (planes,), jnp.float32),
                "sc_conv_w": 0.2 * jax.random.normal(ks[8], (planes, C, 3, 3), jnp.float32),
                "sc_conv_b": 0.1 * jax.random.normal(ks[9], (planes,), jnp.float32),
                "sc_bn_g": 1.0 + 0.1 * jax.random.normal(ks[10], (planes,), jnp.float32),
                "sc_bn_b": 0.1 * jax.random.normal(ks[11], (planes,), jnp.float32),
            })
        return p

    for stride in (1, 2):
        params = init_params(stride)
        out = jax.block_until_ready(basic_block_dec(x, params, stride))
        ref = reference_forward(x, params, stride)
        assert out.shape == ref.shape, (out.shape, ref.shape)
        np.testing.assert_allclose(np.asarray(out), np.asarray(ref),
                                   rtol=1e-3, atol=1e-3)

    print("KERNEL_OK")
</pallas_src>

<mosaic_0001>
module attributes {stable_mosaic.version = 11 : i64} {
  func.func @_basic_block_dec_kernel(%arg0: i32, %arg1: memref<1x8x256xf32, #tpu.memory_space<vmem>>, %arg2: memref<72x256xf32, #tpu.memory_space<vmem>>, %arg3: memref<8x72xf32, #tpu.memory_space<vmem>>, %arg4: memref<8x1xf32, #tpu.memory_space<vmem>>, %arg5: memref<8x1xf32, #tpu.memory_space<vmem>>, %arg6: memref<8x72xf32, #tpu.memory_space<vmem>>, %arg7: memref<8x1xf32, #tpu.memory_space<vmem>>, %arg8: memref<8x1xf32, #tpu.memory_space<vmem>>, %arg9: memref<8x512xf32, #tpu.memory_space<vmem>>, %arg10: memref<8x512xf32, #tpu.memory_space<vmem>>, %arg11: memref<8x512xf32, #tpu.memory_space<vmem>>) attributes {dimension_semantics = [#tpu.dimension_semantics<arbitrary>], iteration_bounds = array<i64: 2>, scalar_prefetch = 0 : i64, scratch_operands = 2 : i64, tpu.core_type = #tpu.core_type<tc>, window_params = [{transform_indices = @transform_0, window_bounds = array<i64: 1, 8, 256>}, {pipeline_mode = #tpu.pipeline_mode<synchronous>, transform_indices = @transform_1, window_bounds = array<i64: 72, 256>}, {pipeline_mode = #tpu.pipeline_mode<synchronous>, transform_indices = @transform_2, window_bounds = array<i64: 8, 72>}, {pipeline_mode = #tpu.pipeline_mode<synchronous>, transform_indices = @transform_3, window_bounds = array<i64: 8, 1>}, {pipeline_mode = #tpu.pipeline_mode<synchronous>, transform_indices = @transform_4, window_bounds = array<i64: 8, 1>}, {pipeline_mode = #tpu.pipeline_mode<synchronous>, transform_indices = @transform_5, window_bounds = array<i64: 8, 72>}, {pipeline_mode = #tpu.pipeline_mode<synchronous>, transform_indices = @transform_6, window_bounds = array<i64: 8, 1>}, {pipeline_mode = #tpu.pipeline_mode<synchronous>, transform_indices = @transform_7, window_bounds = array<i64: 8, 1>}, {pipeline_mode = #tpu.pipeline_mode<synchronous>, transform_indices = @transform_8, window_bounds = array<i64: 8, 512>}]} {
    %c256_i32 = arith.constant 256 : i32
    %0 = arith.muli %arg0, %c256_i32 : i32
    %1 = tpu.assume_multiple %0, 128 : i32
    %c0 = arith.constant 0 : index
    %c0_0 = arith.constant 0 : index
    %2 = vector.load %arg2[%c0, %c0_0] : memref<72x256xf32, #tpu.memory_space<vmem>>, vector<72x256xf32>
    %c0_1 = arith.constant 0 : index
    %c0_2 = arith.constant 0 : index
    %c0_3 = arith.constant 0 : index
    %3 = vector.load %arg1[%c0_1, %c0_2, %c0_3] : memref<1x8x256xf32, #tpu.memory_space<vmem>>, vector<1x8x256xf32>
    %4 = vector.shape_cast %3 : vector<1x8x256xf32> to vector<8x256xf32>
    %5 = vector.extract_strided_slice %4 {offsets = [0, 239], sizes = [8, 17], strides = [1, 1]} : vector<8x256xf32> to vector<8x17xf32>
    %6 = vector.extract_strided_slice %4 {offsets = [0, 0], sizes = [8, 239], strides = [1, 1]} : vector<8x256xf32> to vector<8x239xf32>
    %7 = tpu.concatenate %5, %6 in 1 : vector<8x17xf32>, vector<8x239xf32> -> vector<8x256xf32>
    %8 = vector.extract_strided_slice %4 {offsets = [0, 240], sizes = [8, 16], strides = [1, 1]} : vector<8x256xf32> to vector<8x16xf32>
    %9 = vector.extract_strided_slice %4 {offsets = [0, 0], sizes = [8, 240], strides = [1, 1]} : vector<8x256xf32> to vector<8x240xf32>
    %10 = tpu.concatenate %8, %9 in 1 : vector<8x16xf32>, vector<8x240xf32> -> vector<8x256xf32>
    %11 = vector.extract_strided_slice %4 {offsets = [0, 241], sizes = [8, 15], strides = [1, 1]} : vector<8x256xf32> to vector<8x15xf32>
    %12 = vector.extract_strided_slice %4 {offsets = [0, 0], sizes = [8, 241], strides = [1, 1]} : vector<8x256xf32> to vector<8x241xf32>
    %13 = tpu.concatenate %11, %12 in 1 : vector<8x15xf32>, vector<8x241xf32> -> vector<8x256xf32>
    %14 = vector.extract_strided_slice %4 {offsets = [0, 255], sizes = [8, 1], strides = [1, 1]} : vector<8x256xf32> to vector<8x1xf32>
    %15 = vector.extract_strided_slice %4 {offsets = [0, 0], sizes = [8, 255], strides = [1, 1]} : vector<8x256xf32> to vector<8x255xf32>
    %16 = tpu.concatenate %14, %15 in 1 : vector<8x1xf32>, vector<8x255xf32> -> vector<8x256xf32>
    %17 = vector.extract_strided_slice %4 {offsets = [0, 1], sizes = [8, 255], strides = [1, 1]} : vector<8x256xf32> to vector<8x255xf32>
    %18 = vector.extract_strided_slice %4 {offsets = [0, 0], sizes = [8, 1], strides = [1, 1]} : vector<8x256xf32> to vector<8x1xf32>
    %19 = tpu.concatenate %17, %18 in 1 : vector<8x255xf32>, vector<8x1xf32> -> vector<8x256xf32>
    %20 = vector.extract_strided_slice %4 {offsets = [0, 15], sizes = [8, 241], strides = [1, 1]} : vector<8x256xf32> to vector<8x241xf32>
    %21 = vector.extract_strided_slice %4 {offsets = [0, 0], sizes = [8, 15], strides = [1, 1]} : vector<8x256xf32> to vector<8x15xf32>
    %22 = tpu.concatenate %20, %21 in 1 : vector<8x241xf32>, vector<8x15xf32> -> vector<8x256xf32>
    %23 = vector.extract_strided_slice %4 {offsets = [0, 16], sizes = [8, 240], strides = [1, 1]} : vector<8x256xf32> to vector<8x240xf32>
    %24 = vector.extract_strided_slice %4 {offsets = [0, 0], sizes = [8, 16], strides = [1, 1]} : vector<8x256xf32> to vector<8x16xf32>
    %25 = tpu.concatenate %23, %24 in 1 : vector<8x240xf32>, vector<8x16xf32> -> vector<8x256xf32>
    %26 = vector.extract_strided_slice %4 {offsets = [0, 17], sizes = [8, 239], strides = [1, 1]} : vector<8x256xf32> to vector<8x239xf32>
    %27 = vector.extract_strided_slice %4 {offsets = [0, 0], sizes = [8, 17], strides = [1, 1]} : vector<8x256xf32> to vector<8x17xf32>
    %28 = tpu.concatenate %26, %27 in 1 : vector<8x239xf32>, vector<8x17xf32> -> vector<8x256xf32>
    %29 = tpu.concatenate %7, %10, %13, %16, %4, %19, %22, %25, %28 in 0 : vector<8x256xf32>, vector<8x256xf32>, vector<8x256xf32>, vector<8x256xf32>, vector<8x256xf32>, vector<8x256xf32>, vector<8x256xf32>, vector<8x256xf32>, vector<8x256xf32> -> vector<72x256xf32>
    %30 = arith.mulf %29, %2 : vector<72x256xf32>
    %c0_4 = arith.constant 0 : index
    %c0_5 = arith.constant 0 : index
    %31 = vector.load %arg3[%c0_4, %c0_5] : memref<8x72xf32, #tpu.memory_space<vmem>>, vector<8x72xf32>
    %cst = arith.constant dense<0.000000e+00> : vector<8x256xf32>
    %32 = tpu.matmul %31, %30, %cst {dimension_numbers = #tpu.dot_dimension_numbers<[1], [0], [0], [1], [0, 0, 1, 1], [], []>} : vector<8x72xf32>, vector<72x256xf32>, vector<8x256xf32> -> vector<8x256xf32>
    %c0_6 = arith.constant 0 : index
    %33 = arith.index_cast %1 : i32 to index
    %34 = vector.load %arg10[%c0_6, %33] : memref<8x512xf32, #tpu.memory_space<vmem>>, vector<8x256xf32>
    tpu.vector_store %arg10[%c0_6, %33], %32 {strides = array<i32>} : memref<8x512xf32, #tpu.memory_space<vmem>>, vector<8x256xf32>,
    %c0_7 = arith.constant 0 : index
    %35 = arith.index_cast %1 : i32 to index
    %36 = vector.load %arg11[%c0_7, %35] : memref<8x512xf32, #tpu.memory_space<vmem>>, vector<8x256xf32>
    tpu.vector_store %arg11[%c0_7, %35], %4 {strides = array<i32>} : memref<8x512xf32, #tpu.memory_space<vmem>>, vector<8x256xf32>,
    %c1_i32 = arith.constant 1 : i32
    %37 = arith.cmpi eq, %arg0, %c1_i32 : i32
    %38 = arith.extui %37 : i1 to i32
    %c0_i32 = arith.constant 0 : i32
    %39 = arith.cmpi ne, %38, %c0_i32 : i32
    scf.if %39 {
      %c0_8 = arith.constant 0 : index
      %c0_9 = arith.constant 0 : index
      %40 = vector.load %arg10[%c0_8, %c0_9] : memref<8x512xf32, #tpu.memory_space<vmem>>, vector<8x512xf32>
      %cst_10 = arith.constant dense<0.000000e+00> : vector<8xf32>
      %41 = vector.multi_reduction <add>, %40, %cst_10 [1] : vector<8x512xf32> to vector<8xf32>
      %42 = vector.shape_cast %41 : vector<8xf32> to vector<8x1xf32>
      %cst_11 = arith.constant 5.120000e+02 : f32
      %43 = vector.broadcast %cst_11 : f32 to vector<8x1xf32>
      %44 = arith.divf %42, %43 : vector<8x1xf32>
      %45 = arith.mulf %40, %40 : vector<8x512xf32>
      %cst_12 = arith.constant dense<0.000000e+00> : vector<8xf32>
      %46 = vector.multi_reduction <add>, %45, %cst_12 [1] : vector<8x512xf32> to vector<8xf32>
      %47 = vector.shape_cast %46 : vector<8xf32> to vector<8x1xf32>
      %cst_13 = arith.constant 5.120000e+02 : f32
      %48 = vector.broadcast %cst_13 : f32 to vector<8x1xf32>
      %49 = arith.divf %47, %48 : vector<8x1xf32>
      %50 = arith.mulf %44, %44 : vector<8x1xf32>
      %51 = arith.subf %49, %50 : vector<8x1xf32>
      %cst_14 = arith.constant 9.99999974E-6 : f32
      %52 = vector.broadcast %cst_14 : f32 to vector<8x1xf32>
      %53 = arith.addf %51, %52 : vector<8x1xf32>
      %54 = math.rsqrt %53 : vector<8x1xf32>
      %c0_15 = arith.constant 0 : index
      %c0_16 = arith.constant 0 : index
      %55 = vector.load %arg4[%c0_15, %c0_16] : memref<8x1xf32, #tpu.memory_space<vmem>>, vector<8x1xf32>
      %56 = arith.mulf %55, %54 : vector<8x1xf32>
      %57 = vector.broadcast %56 : vector<8x1xf32> to vector<8x512xf32>
      %58 = arith.mulf %40, %57 : vector<8x512xf32>
      %c0_17 = arith.constant 0 : index
      %c0_18 = arith.constant 0 : index
      %59 = vector.load %arg5[%c0_17, %c0_18] : memref<8x1xf32, #tpu.memory_space<vmem>>, vector<8x1xf32>
      %60 = arith.mulf %44, %56 : vector<8x1xf32>
      %61 = arith.subf %59, %60 : vector<8x1xf32>
      %62 = vector.broadcast %61 : vector<8x1xf32> to vector<8x512xf32>
      %63 = arith.addf %58, %62 : vector<8x512xf32>
      %cst_19 = arith.constant 0.000000e+00 : f32
      %64 = vector.broadcast %cst_19 : f32 to vector<8x512xf32>
      %65 = arith.maximumf %63, %64 : vector<8x512xf32>
      %66 = tpu.concatenate %2, %2 in 1 : vector<72x256xf32>, vector<72x256xf32> -> vector<72x512xf32>
      %67 = vector.extract_strided_slice %65 {offsets = [0, 495], sizes = [8, 17], strides = [1, 1]} : vector<8x512xf32> to vector<8x17xf32>
      %68 = vector.extract_strided_slice %65 {offsets = [0, 0], sizes = [8, 495], strides = [1, 1]} : vector<8x512xf32> to vector<8x495xf32>
      %69 = tpu.concatenate %67, %68 in 1 : vector<8x17xf32>, vector<8x495xf32> -> vector<8x512xf32>
      %70 = vector.extract_strided_slice %65 {offsets = [0, 496], sizes = [8, 16], strides = [1, 1]} : vector<8x512xf32> to vector<8x16xf32>
      %71 = vector.extract_strided_slice %65 {offsets = [0, 0], sizes = [8, 496], strides = [1, 1]} : vector<8x512xf32> to vector<8x496xf32>
      %72 = tpu.concatenate %70, %71 in 1 : vector<8x16xf32>, vector<8x496xf32> -> vector<8x512xf32>
      %73 = vector.extract_strided_slice %65 {offsets = [0, 497], sizes = [8, 15], strides = [1, 1]} : vector<8x512xf32> to vector<8x15xf32>
      %74 = vector.extract_strided_slice %65 {offsets = [0, 0], sizes = [8, 497], strides = [1, 1]} : vector<8x512xf32> to vector<8x497xf32>
      %75 = tpu.concatenate %73, %74 in 1 : vector<8x15xf32>, vector<8x497xf32> -> vector<8x512xf32>
      %76 = vector.extract_strided_slice %65 {offsets = [0, 511], sizes = [8, 1], strides = [1, 1]} : vector<8x512xf32> to vector<8x1xf32>
      %77 = vector.extract_strided_slice %65 {offsets = [0, 0], sizes = [8, 511], strides = [1, 1]} : vector<8x512xf32> to vector<8x511xf32>
      %78 = tpu.concatenate %76, %77 in 1 : vector<8x1xf32>, vector<8x511xf32> -> vector<8x512xf32>
      %79 = vector.extract_strided_slice %65 {offsets = [0, 1], sizes = [8, 511], strides = [1, 1]} : vector<8x512xf32> to vector<8x511xf32>
      %80 = vector.extract_strided_slice %65 {offsets = [0, 0], sizes = [8, 1], strides = [1, 1]} : vector<8x512xf32> to vector<8x1xf32>
      %81 = tpu.concatenate %79, %80 in 1 : vector<8x511xf32>, vector<8x1xf32> -> vector<8x512xf32>
      %82 = vector.extract_strided_slice %65 {offsets = [0, 15], sizes = [8, 497], strides = [1, 1]} : vector<8x512xf32> to vector<8x497xf32>
      %83 = vector.extract_strided_slice %65 {offsets = [0, 0], sizes = [8, 15], strides = [1, 1]} : vector<8x512xf32> to vector<8x15xf32>
      %84 = tpu.concatenate %82, %83 in 1 : vector<8x497xf32>, vector<8x15xf32> -> vector<8x512xf32>
      %85 = vector.extract_strided_slice %65 {offsets = [0, 16], sizes = [8, 496], strides = [1, 1]} : vector<8x512xf32> to vector<8x496xf32>
      %86 = vector.extract_strided_slice %65 {offsets = [0, 0], sizes = [8, 16], strides = [1, 1]} : vector<8x512xf32> to vector<8x16xf32>
      %87 = tpu.concatenate %85, %86 in 1 : vector<8x496xf32>, vector<8x16xf32> -> vector<8x512xf32>
      %88 = vector.extract_strided_slice %65 {offsets = [0, 17], sizes = [8, 495], strides = [1, 1]} : vector<8x512xf32> to vector<8x495xf32>
      %89 = vector.extract_strided_slice %65 {offsets = [0, 0], sizes = [8, 17], strides = [1, 1]} : vector<8x512xf32> to vector<8x17xf32>
      %90 = tpu.concatenate %88, %89 in 1 : vector<8x495xf32>, vector<8x17xf32> -> vector<8x512xf32>
      %91 = tpu.concatenate %69, %72, %75, %78, %65, %81, %84, %87, %90 in 0 : vector<8x512xf32>, vector<8x512xf32>, vector<8x512xf32>, vector<8x512xf32>, vector<8x512xf32>, vector<8x512xf32>, vector<8x512xf32>, vector<8x512xf32>, vector<8x512xf32> -> vector<72x512xf32>
      %92 = arith.mulf %91, %66 : vector<72x512xf32>
      %c0_20 = arith.constant 0 : index
      %c0_21 = arith.constant 0 : index
      %93 = vector.load %arg6[%c0_20, %c0_21] : memref<8x72xf32, #tpu.memory_space<vmem>>, vector<8x72xf32>
      %cst_22 = arith.constant dense<0.000000e+00> : vector<8x512xf32>
      %94 = tpu.matmul %93, %92, %cst_22 {dimension_numbers = #tpu.dot_dimension_numbers<[1], [0], [0], [1], [0, 0, 1, 1], [], []>} : vector<8x72xf32>, vector<72x512xf32>, vector<8x512xf32> -> vector<8x512xf32>
      %cst_23 = arith.constant dense<0.000000e+00> : vector<8xf32>
      %95 = vector.multi_reduction <add>, %94, %cst_23 [1] : vector<8x512xf32> to vector<8xf32>
      %96 = vector.shape_cast %95 : vector<8xf32> to vector<8x1xf32>
      %cst_24 = arith.constant 5.120000e+02 : f32
      %97 = vector.broadcast %cst_24 : f32 to vector<8x1xf32>
      %98 = arith.divf %96, %97 : vector<8x1xf32>
      %99 = arith.mulf %94, %94 : vector<8x512xf32>
      %cst_25 = arith.constant dense<0.000000e+00> : vector<8xf32>
      %100 = vector.multi_reduction <add>, %99, %cst_25 [1] : vector<8x512xf32> to vector<8xf32>
      %101 = vector.shape_cast %100 : vector<8xf32> to vector<8x1xf32>
      %cst_26 = arith.constant 5.120000e+02 : f32
      %102 = vector.broadcast %cst_26 : f32 to vector<8x1xf32>
      %103 = arith.divf %101, %102 : vector<8x1xf32>
      %104 = arith.mulf %98, %98 : vector<8x1xf32>
      %105 = arith.subf %103, %104 : vector<8x1xf32>
      %cst_27 = arith.constant 9.99999974E-6 : f32
      %106 = vector.broadcast %cst_27 : f32 to vector<8x1xf32>
      %107 = arith.addf %105, %106 : vector<8x1xf32>
      %108 = math.rsqrt %107 : vector<8x1xf32>
      %c0_28 = arith.constant 0 : index
      %c0_29 = arith.constant 0 : index
      %109 = vector.load %arg7[%c0_28, %c0_29] : memref<8x1xf32, #tpu.memory_space<vmem>>, vector<8x1xf32>
      %110 = arith.mulf %109, %108 : vector<8x1xf32>
      %111 = vector.broadcast %110 : vector<8x1xf32> to vector<8x512xf32>
      %112 = arith.mulf %94, %111 : vector<8x512xf32>
      %c0_30 = arith.constant 0 : index
      %c0_31 = arith.constant 0 : index
      %113 = vector.load %arg8[%c0_30, %c0_31] : memref<8x1xf32, #tpu.memory_space<vmem>>, vector<8x1xf32>
      %114 = arith.mulf %98, %110 : vector<8x1xf32>
      %115 = arith.subf %113, %114 : vector<8x1xf32>
      %116 = vector.broadcast %115 : vector<8x1xf32> to vector<8x512xf32>
      %117 = arith.addf %112, %116 : vector<8x512xf32>
      %c0_32 = arith.constant 0 : index
      %c0_33 = arith.constant 0 : index
      %118 = vector.load %arg11[%c0_32, %c0_33] : memref<8x512xf32, #tpu.memory_space<vmem>>, vector<8x512xf32>
      %119 = arith.addf %117, %118 : vector<8x512xf32>
      %cst_34 = arith.constant 0.000000e+00 : f32
      %120 = vector.broadcast %cst_34 : f32 to vector<8x512xf32>
      %121 = arith.maximumf %119, %120 : vector<8x512xf32>
      %c0_35 = arith.constant 0 : index
      %c0_36 = arith.constant 0 : index
      %122 = vector.load %arg9[%c0_35, %c0_36] : memref<8x512xf32, #tpu.memory_space<vmem>>, vector<8x512xf32>
      tpu.vector_store %arg9[%c0_35, %c0_36], %121 {strides = array<i32>} : memref<8x512xf32, #tpu.memory_space<vmem>>, vector<8x512xf32>,
    } else {
    }
    return
  }
  func.func @transform_0(%arg0: i32) -> (i32, i32, i32) {
    %c0_i32 = arith.constant 0 : i32
    %c0_i32_0 = arith.constant 0 : i32
    %c0_i32_1 = arith.constant 0 : i32
    return %arg0, %c0_i32, %c0_i32_0 : i32, i32, i32
  }
  func.func @transform_1(%arg0: i32) -> (i32, i32) {
    %c0_i32 = arith.constant 0 : i32
    %c0_i32_0 = arith.constant 0 : i32
    %c0_i32_1 = arith.constant 0 : i32
    return %c0_i32, %c0_i32_0 : i32, i32
  }
  func.func @transform_2(%arg0: i32) -> (i32, i32) {
    %c0_i32 = arith.constant 0 : i32
    %c0_i32_0 = arith.constant 0 : i32
    %c0_i32_1 = arith.constant 0 : i32
    return %c0_i32, %c0_i32_0 : i32, i32
  }
  func.func @transform_3(%arg0: i32) -> (i32, i32) {
    %c0_i32 = arith.constant 0 : i32
    %c0_i32_0 = arith.constant 0 : i32
    %c0_i32_1 = arith.constant 0 : i32
    return %c0_i32, %c0_i32_0 : i32, i32
  }
  func.func @transform_4(%arg0: i32) -> (i32, i32) {
    %c0_i32 = arith.constant 0 : i32
    %c0_i32_0 = arith.constant 0 : i32
    %c0_i32_1 = arith.constant 0 : i32
    return %c0_i32, %c0_i32_0 : i32, i32
  }
  func.func @transform_5(%arg0: i32) -> (i32, i32) {
    %c0_i32 = arith.constant 0 : i32
    %c0_i32_0 = arith.constant 0 : i32
    %c0_i32_1 = arith.constant 0 : i32
    return %c0_i32, %c0_i32_0 : i32, i32
  }
  func.func @transform_6(%arg0: i32) -> (i32, i32) {
    %c0_i32 = arith.constant 0 : i32
    %c0_i32_0 = arith.constant 0 : i32
    %c0_i32_1 = arith.constant 0 : i32
    return %c0_i32, %c0_i32_0 : i32, i32
  }
  func.func @transform_7(%arg0: i32) -> (i32, i32) {
    %c0_i32 = arith.constant 0 : i32
    %c0_i32_0 = arith.constant 0 : i32
    %c0_i32_1 = arith.constant 0 : i32
    return %c0_i32, %c0_i32_0 : i32, i32
  }
  func.func @transform_8(%arg0: i32) -> (i32, i32) {
    %c0_i32 = arith.constant 0 : i32
    %c0_i32_0 = arith.constant 0 : i32
    %c0_i32_1 = arith.constant 0 : i32
    return %c0_i32, %c0_i32_0 : i32, i32
  }
}

</mosaic_0001>

<bundles_post_ra>
// kernel: tpu_custom_call.1
= control target key start
LH: loop header
LB: loop body
LE: loop exit
PB: predicated region body
PF: predicated region fallthrough
CT: control target
= control target key end

     0   :  { %13 = vsyncpa [#allocation5], 0  ;;  %s1642_s0 = inlined_call_operand.hbm [shape: f32[2,8,256], index: 0, kind: input, shape index: {}]   ;;  %s1643_s1 = inlined_call_operand.hbm [shape: f32[72,256], index: 1, kind: input, shape index: {}]   ;;  %s1644_s2 = inlined_call_operand.vmem [shape: f32[8,72], index: 2, kind: input, shape index: {}]   ;;  %s1645_s3 = inlined_call_operand.vmem [shape: f32[8,1], index: 3, kind: input, shape index: {}]   ;;  %s1646_s4 = inlined_call_operand.vmem [shape: f32[8,1], index: 4, kind: input, shape index: {}]   ;;  %s1647_s5 = inlined_call_operand.vmem [shape: f32[8,72], index: 5, kind: input, shape index: {}]   ;;  %s1648_s6 = inlined_call_operand.vmem [shape: f32[8,1], index: 6, kind: input, shape index: {}]   ;;  %s1649_s7 = inlined_call_operand.vmem [shape: f32[8,1], index: 7, kind: input, shape index: {}]   ;;  %s1650_s8 = inlined_call_operand.hbm [shape: f32[8,512], index: 8, kind: output, shape index: {}]  }
   0x1   :  { %15 = vsyncpa [#allocation5 + $0x1], 0 }
   0x2   :  { %16 = vsyncpa [#allocation8], 0 }
   0x3   :  { %17 = vsyncpa [#allocation6], 0  ;;  %s1286_s27 = smov 0   ;;  %s1288_s28 = smov 0  }
   0x4   :  { %s1290_s29 = smov 0   ;;  %s1292_s30 = smov 0  }
   0x5 LB: > { %s233_s11 = sshll.u32 %s1643_s1, 4  ;;  %s1308_s12 = sadd.s32 4294967295, %s1217_s30   ;;  %s1217_s30 = sphi %s1292_s30, %s1657_s30   ;;  %s1213_s29 = sphi %s1290_s29, %s1656_s29   ;;  %s1209_s28 = sphi %s1288_s28, %s1655_s28   ;;  %s1205_s27 = sphi %s1286_s27, %s1654_s27   ;;  %s234_s11 = int_to_ptr.hbm [resolvable:$true] %s233_s11 }
   0x6   : > { %p978_p0 = scmp.ge.s32.totalorder %s1217_s30, 1  ;;  %p44_p1 = scmp.eq.s32.totalorder %s1308_s12, 0 }
   0x7   : > { %p222_p2 = scmp.lt.s32.totalorder %s1217_s30, 3  ;;  %s1219_s14 = smov [#allocation7]  }
   0x8   : > { %s235_s15 = sshll.u32 %s1219_s14, 4  ;;  %s1220_s16 = smov 256   ;;  %s236_s15 = int_to_ptr.vmem [resolvable:$true] %s235_s15 }
   0x9   : > { %p1313_p3 = pnand %p978_p0, %p222_p2  ;;  %s1221_s17 = smov 16  }
   0xa   : > { %s1322_s18 = sadd.s32 1, %s1217_s30   ;;  %s30_s20 = sadd.s32 1, %s1213_s29 }
   0xb   : > { %p1012_p4 = pneg %p1313_p3  ;;  %s27_s19 = ssub.s32 %s1217_s30, %s1322_s18 }
   0xc   : > { %p28_p6 = scmp.eq.s32.totalorder %s27_s19, 0  ;;  %p37_p7 = scmp.ne.s32.totalorder %s1213_s29, %s1209_s28 }
   0xd   : > { %p1013_p5 = pnand %p1012_p4, %p44_p1  ;;  %p38_p8 = scmp.eq.s32.totalorder %s1217_s30, 0 }
   0xe   : > { %p43_p9 = scmp.ne.s32.totalorder %s1209_s28, %s1205_s27  ;;  %p1021_p12 = scmp.lt.s32.totalorder %s1217_s30, 2 }
   0xf   : > { %1015 = dma.hbm_to_vmem [thread:$0]  (!%p1013_p5), %s234_s11, 2304, %s236_s15, [#allocation8], %s1220_s16, %s1220_s16, %s1221_s17  }
  0x10   : > { %s1332_s21 = scalar_select %p28_p6, %s1213_s29, %s30_s20  }
  0x11   : > { %p39_p10 = por %p38_p8, %p37_p7  ;;  %p1336_p11 = por %p44_p1, %p43_p9 }
  0x12   : > { %s267_s23 = sand.u32 1, %s1213_s29   ;;  %s1001_s25 = sshll.u32 %s1217_s30, 4 }
  0x13   : > { %s981_s24 = sshll.u32 %s267_s23, 4  ;;  %s276_s10 = scalar_lea.hbm %s1642_s0, %s1001_s25 }
  0x14   : > { %s271_s11 = scalar_lea.vmem [#allocation4], %s981_s24  ;;  %s278_s15 = sshll.u32 %s276_s10, 4  ;;  %s279_s15 = int_to_ptr.hbm [resolvable:$true] %s278_s15 }
  0x15   : > { %s280_s14 = sshll.u32 %s271_s11, 4  ;;  %p1346_p13 = pnand %p1021_p12, %p39_p10  ;;  %s281_s14 = int_to_ptr.vmem [resolvable:$true] %s280_s14 }
  0x16   : > { %s268_s16 = scalar_lea.sflag [#allocation5], %s267_s23  ;;  %s1117_s17 = sshra.s32 %s279_s15, 4  ;;  %s1118_s17 = int_to_ptr.hbm [resolvable:$true] %s1117_s17 }
  0x17   : > { %s1119_s19 = scalar_lea.hbm %s1118_s17, 16  ;;  %p1121_p2 = pneg %p1346_p13 }
  0x18   : > { %p1120_p0 = scmp.ne.s32.totalorder %s1118_s17, %s1119_s19  ;;  %s1124_s24 = scalar_lea.hbm %s1642_s0, 32 }
  0x19   : > { %p1125_p6 = scmp.lt.s32.totalorder %s1118_s17, %s1642_s0  ;;  %p1126_p7 = scmp.lt.s32.totalorder %s1124_s24, %s1119_s19 }
  0x1a   : > { %p1122_p4 = pnand %p1121_p2, %p1120_p0 }
  0x1b   : > { %p1127_p8 = por %p1126_p7, %p1125_p6 }
  0x1c   : > { %p1123_p5 = pneg %p1122_p4 }
  0x1e   : > { %p1128_p9 = pnand %p1127_p8, %p1123_p5 }
  0x20   : > { %1131 = shalt.err (!%p1128_p9)
}
  0x21   : > { %1019 = dma.hbm_to_vmem [thread:$0]  (!%p1346_p13), %s279_s15, 256, %s281_s14, %s268_s16  }
  0x22   : > { %289 = sbr.rel (%p1313_p3) target bundleno = 1233 (0x4d1), region = 52  ;;  %s291_s23 = sand.u32 (!%p1313_p3), 1, %s1209_s28  }
  0x23   : > { %s985_s9 = sshll.u32 (!%p1313_p3), %s291_s23, 4  ;;  %s292_s10 = scalar_lea.sflag (!%p1313_p3), [#allocation5], %s291_s23 }
  0x24   : > { %s295_s11 = scalar_lea.vmem (!%p1313_p3), [#allocation4], %s985_s9 }
  0x27   : > { %1192 = dma.done.wait (%p1336_p11), %s292_s10, 256  }
  0x28   : > { %1194 = vsyncadd (%p1336_p11), %s292_s10, 4294967040 }
  0x29   : > { %1196 = dma.done.wait (%p44_p1), [#allocation8], 2304  }
  0x2a   : > { %1198 = vsyncadd (%p44_p1), [#allocation8], 4294964992  ;;  %v1371_v0 = vld [vmem:[%s295_s11] sm:$0xff]  ;;  %s1222_s13 = smov 112   ;;  %s1223_s14 = smov 111   ;;  %v1376_v1 = vld [vmem:[%s295_s11 + $0x8] sm:$0xff] }
  0x2b   : > { %412 = vrot.lane.b32.xlu1 %v1371_v0, %s1222_s13  ;;  %422 = vrot.lane.b32.xlu0 %v1371_v0, %s1223_s14  ;;  %s1224_s15 = smov 113   ;;  %s1225_s22 = smov 127   ;;  %vm416_vm0 = vcmask 916480   ;;  %vm426_vm1 = vcmask 908288   ;;  %v1391_v6 = vld [vmem:[#allocation7 + $0x80] sm:$0xff]  ;;  %v1393_v7 = vld [vmem:[#allocation7 + $0x88] sm:$0xff] }
  0x2c   : > { %402 = vrot.lane.b32.xlu2 %v1371_v0, %s1224_s15  ;;  %s1226_s27 = smov 1   ;;  %s1227_s16 = smov 15   ;;  %vm406_vm2 = vcmask 924672   ;;  %v1399_v14 = vld [vmem:[#allocation7 + $0x70] sm:$0xff]  ;;  %v1401_v15 = vld [vmem:[#allocation7 + $0x78] sm:$0xff]  ;;  %v1407_v20 = vld [vmem:[#allocation7 + $0x60] sm:$0xff] }
  0x2d   : > { %s1228_s17 = smov 16   ;;  %s1229_s19 = smov 17   ;;  %v1409_v21 = vld [vmem:[#allocation7 + $0x68] sm:$0xff]  ;;  %vm396_vm3 = vcmask 1039360   ;;  %v1415_v27 = vld [vmem:[#allocation7 + $0x50] sm:$0xff]  ;;  %v1417_v28 = vld [vmem:[#allocation7 + $0x58] sm:$0xff] }
  0x2e   : > { %v1419_v29 = vld [vmem:[#allocation7 + $0x40] sm:$0xff]  ;;  %v1421_v30 = vld [vmem:[#allocation7 + $0x48] sm:$0xff]  ;;  %vm387_vm4 = vcmask 7168   ;;  %v1431_v39 = vld [vmem:[#allocation7 + $0x30] sm:$0xff]  ;;  %vm377_vm5 = vcmask 121856   ;;  %vm367_vm6 = vcmask 130048  }
  0x2f   : > { %v440_v37 = vmul.f32 %v1371_v0, %v1419_v29  ;;  %v441_v38 = vmul.f32 %v1376_v1, %v1421_v30  ;;  %v1433_v41 = vld [vmem:[#allocation7 + $0x38] sm:$0xff]  ;;  %v1435_v42 = vld [vmem:[#allocation7 + $0x20] sm:$0xff]  ;;  %v1437_v43 = vld [vmem:[#allocation7 + $0x28] sm:$0xff]  ;;  %s987_s30 = sshll.u32 %s1308_s12, 8  ;;  %vm357_vm7 = vcmask 138240   ;;  %vm451_vm8 = vcmask 588800  }
  0x30   : > { %v1447_v54 = vld [vmem:[#allocation7 + $0x10] sm:$0xff]  ;;  %v1449_v55 = vld [vmem:[#allocation7 + $0x18] sm:$0xff]  ;;  %v1456_v63 = vld [vmem:[#allocation7] sm:$0xff]  ;;  %s495_s20 = sshra.s32 %s987_s30, 7  ;;  %p992_p1 = scmp.ne.s32.totalorder %s1308_s12, 1 }
  0x31   : > { %s990_s24 = sshll.u32 %s495_s20, 3  ;;  %s1238_s30 = smov (!%p992_p1), 16  }
  0x32   : > { %s502_s23 = scalar_lea.vmem [#allocation3], %s990_s24  ;;  %s498_s9 = scalar_lea.vmem [#allocation2], %s990_s24 }
  0x33   : > { %414 = vrot.lane.b32.xlu1 %v1376_v1, %s1222_s13  ;;  %424 = vrot.lane.b32.xlu0 %v1376_v1, %s1223_s14  ;;  %503 = vst [vmem:[%s502_s23] sm:$0xff] %v1371_v0  ;;  %s1239_s20 = smov (!%p992_p1), 17  }
  0x34   : > { %404 = vrot.lane.b32.xlu2 %v1376_v1, %s1224_s15  ;;  %504 = vst [vmem:[%s502_s23 + $0x8] sm:$0xff] %v1376_v1  ;;  %s1232_s15 = smov (!%p992_p1), 112  }
  0x3b   : > { %394 = vrot.lane.b32.xlu1 %v1376_v1, %s1225_s22  ;;  %392 = vrot.lane.b32.xlu0 %v1371_v0, %s1225_s22  ;;  %s1233_s22 = smov (!%p992_p1), 111  }
  0x3c   : > { %382 = vrot.lane.b32.xlu2 %v1376_v1, %s1226_s27 }
  0x43   : > { %372 = vrot.lane.b32.xlu1 %v1376_v1, %s1227_s16  ;;  %385 = vrot.lane.b32.xlu0 %v1371_v0, %s1226_s27  ;;  %s1234_s27 = smov (!%p992_p1), 113  }
  0x44   : > { %375 = vrot.lane.b32.xlu2 %v1371_v0, %s1227_s16  ;;  %s1235_s16 = smov (!%p992_p1), 127  }
  0x4b   : > { %365 = vrot.lane.b32.xlu1 %v1371_v0, %s1228_s17  ;;  %362 = vrot.lane.b32.xlu0 %v1376_v1, %s1228_s17  ;;  %s1236_s17 = smov (!%p992_p1), 1  }
  0x4c   : > { %351 = vrot.lane.b32.xlu2 %v1376_v1, %s1229_s19 }
  0x53   : > { %355 = vrot.lane.b32.xlu0 %v1371_v0, %s1229_s19  ;;  %s1237_s19 = smov (!%p992_p1), 15  }
  0x86   : > { %v403_v2 = vpop.permute.xlu2 %402 }
  0x8e   : > { %v405_v5 = vpop.permute.xlu2 %404 }
  0x8f   : > { %v407_v18 = vsel %vm406_vm2, %v403_v2, %v405_v5  ;;  %v411_v19 = vsel %vm406_vm2, %v405_v5, %v403_v2  ;;  %v1458_v2 = vld [vmem:[#allocation7 + $0x8] sm:$0xff] }
  0x90   : > { %v444_v25 = vmul.f32 %v407_v18, %v1407_v20  ;;  %v445_v26 = vmul.f32 %v411_v19, %v1409_v21 }
  0x96   : > { %v383_v24 = vpop.permute.xlu2 %382 }
  0x9d   : > { %v413_v3 = vpop.permute.xlu1 %412  ;;  %v423_v4 = vpop.permute.xlu0 %422 }
  0x9e   : > { %v376_v40 = vpop.permute.xlu2 %375 }
  0xa5   : > { %v415_v8 = vpop.permute.xlu1 %414  ;;  %v425_v9 = vpop.permute.xlu0 %424 }
  0xa6   : > { %v417_v10 = vsel %vm416_vm0, %v413_v3, %v415_v8  ;;  %v421_v11 = vsel %vm416_vm0, %v415_v8, %v413_v3  ;;  %v427_v12 = vsel %vm426_vm1, %v423_v4, %v425_v9  ;;  %v431_v13 = vsel %vm426_vm1, %v425_v9, %v423_v4  ;;  %v352_v62 = vpop.permute.xlu2 %351 }
  0xa7   : > { %v448_v16 = vmul.f32 %v427_v12, %v1391_v6  ;;  %v449_v17 = vmul.f32 %v431_v13, %v1393_v7  ;;  %v446_v22 = vmul.f32 %v417_v10, %v1399_v14  ;;  %v447_v23 = vmul.f32 %v421_v11, %v1401_v15  ;;  %v450_v10 = vld [vmem:[%s1644_s2] sm:$0xff] }
  0xa9   : > { %462 = vmatpush.msra.mxu0 %v448_v16  ;;  %482 = vmatpush.msra.mxu1 %v449_v17 }
  0xab   : > { %463 = vmatpush.msra.mxu0 %v446_v22  ;;  %483 = vmatpush.msra.mxu1 %v447_v23 }
  0xad   : > { %v395_v31 = vpop.permute.xlu1 %394  ;;  %v393_v32 = vpop.permute.xlu0 %392  ;;  %464 = vmatpush.msra.mxu0 %v444_v25  ;;  %484 = vmatpush.msra.mxu1 %v445_v26 }
  0xae   : > { %v397_v33 = vsel %vm396_vm3, %v393_v32, %v395_v31  ;;  %v401_v34 = vsel %vm396_vm3, %v395_v31, %v393_v32 }
  0xaf   : > { %v442_v35 = vmul.f32 %v397_v33, %v1415_v27  ;;  %v443_v36 = vmul.f32 %v401_v34, %v1417_v28 }
  0xb1   : > { %465 = vmatpush.msra.mxu0 %v442_v35  ;;  %485 = vmatpush.msra.mxu1 %v443_v36 }
  0xb3   : > { %466 = vmatpush.msra.mxu0 %v440_v37  ;;  %486 = vmatpush.msra.mxu1 %v441_v38 }
  0xb5   : > { %v373_v44 = vpop.permute.xlu1 %372  ;;  %v386_v45 = vpop.permute.xlu0 %385 }
  0xb6   : > { %v388_v46 = vsel %vm387_vm4, %v386_v45, %v383_v24  ;;  %v391_v47 = vsel %vm387_vm4, %v383_v24, %v386_v45  ;;  %v378_v48 = vsel %vm377_vm5, %v376_v40, %v373_v44  ;;  %v381_v49 = vsel %vm377_vm5, %v373_v44, %v376_v40 }
  0xb7   : > { %v438_v50 = vmul.f32 %v391_v47, %v1431_v39  ;;  %v439_v51 = vmul.f32 %v388_v46, %v1433_v41  ;;  %v436_v52 = vmul.f32 %v381_v49, %v1435_v42  ;;  %v437_v53 = vmul.f32 %v378_v48, %v1437_v43 }
  0xb9   : > { %467 = vmatpush.msra.mxu0 %v438_v50  ;;  %487 = vmatpush.msra.mxu1 %v439_v51 }
  0xbb   : > { %468 = vmatpush.msra.mxu0 %v436_v52  ;;  %488 = vmatpush.msra.mxu1 %v437_v53 }
  0xbd   : > { %v366_v56 = vpop.permute.xlu1 %365  ;;  %v363_v57 = vpop.permute.xlu0 %362 }
  0xbe   : > { %v368_v58 = vsel %vm367_vm6, %v366_v56, %v363_v57  ;;  %v371_v59 = vsel %vm367_vm6, %v363_v57, %v366_v56 }
  0xbf   : > { %v434_v60 = vmul.f32 %v371_v59, %v1447_v54  ;;  %v435_v61 = vmul.f32 %v368_v58, %v1449_v55 }
  0xc1   : > { %469 = vmatpush.msra.mxu0 %v434_v60  ;;  %489 = vmatpush.msra.mxu1 %v435_v61 }
  0xc5   : > { %v356_v3 = vpop.permute.xlu0 %355 }
  0xc6   : > { %v358_v4 = vsel %vm357_vm7, %v356_v3, %v352_v62  ;;  %v361_v5 = vsel %vm357_vm7, %v352_v62, %v356_v3 }
  0xc7   : > { %v432_v8 = vmul.f32 %v361_v5, %v1456_v63  ;;  %v433_v9 = vmul.f32 %v358_v4, %v1458_v2 }
  0xc9   : > { %470 = vmatpush.msra.mxu0 %v432_v8  ;;  %490 = vmatpush.msra.mxu1 %v433_v9 }
  0xca   : > { %988 = vmatmul.msk.f32.vlgmr.msra.gmra.mxu0 %vm451_vm8, %v450_v10  ;;  %989 = vmatmul.msk.f32.vlgmr.msra.gmra.mxu1 %vm451_vm8, %v450_v10 }
 0x145   : > { %508 = sbr.rel (%p992_p1) target bundleno = 1228 (0x4cc), region = 64 }
 0x147   : > { %v472_v11 = vpop.f32.mrf.mxu0  ;;  %v492_v12 = vpop.f32.mrf.mxu1 }
 0x148   : > { %499 = vst [vmem:[%s498_s9] sm:$0xff] %v472_v11 }
 0x149   : > { %500 = vst [vmem:[%s498_s9 + $0x8] sm:$0xff] %v492_v12 }
 0x14a   : > { %v1230_v33 = vmov 512.0   ;;  %v1231_v37 = vmov 0   ;;  %v549_v60 = vld [vmem:[%s1645_s3] sm:$0xff] }
 0x14b   : > { %1081 = vrcp.f32 %v1230_v33  ;;  %1079 = vset.pattern.permute.xlu1 %v1231_v37  ;;  %1080 = vset.pattern.permute.xlu0 %v1231_v37  ;;  %v560_v4 = vld [vmem:[%s1646_s4] sm:$0xff] }
 0x150   : > { %v1472_v13 = vld [vmem:[#allocation2] sm:$0xff]  ;;  %v1474_v16 = vld [vmem:[#allocation2 + $0x8] sm:$0xff]  ;;  %v511_v0 = vld [vmem:[#allocation2 + $0x10] sm:$0xff] }
 0x151   : > { %v513_v1 = vadd.f32 %v1474_v16, %v1472_v13  ;;  %v526_v17 = vmul.f32 %v1472_v13, %v1472_v13  ;;  %v527_v18 = vmul.f32 %v1474_v16, %v1474_v16  ;;  %v512_v19 = vld [vmem:[#allocation2 + $0x18] sm:$0xff]  ;;  %v528_v23 = vmul.f32 %v511_v0, %v511_v0  ;;  %v1082_v34 = vpop.eup %1081 }
 0x152   : > { %v529_v26 = vmul.f32 %v512_v19, %v512_v19  ;;  %v519_v35 = vmul.f32 512.0, %v1082_v34  ;;  %vm523_vm9 = vweird.f32 %v1082_v34 }
 0x153   : > { %v514_v22 = vadd.f32 %v513_v1, %v511_v0  ;;  %v530_v24 = vadd.f32 %v527_v18, %v526_v17 }
 0x154   : > { %v520_v36 = vsub.f32 1.0, %v519_v35 }
 0x155   : > { %v515_v25 = vadd.f32 %v514_v22, %v512_v19  ;;  %v531_v31 = vadd.f32 %v530_v24, %v528_v23 }
 0x156   : > { %v521_v38 = vmul.f32 %v1082_v34, %v520_v36 }
 0x157   : > { %516 = vadd.xlane.f32.xlu0 %v515_v25  ;;  %v532_v32 = vadd.f32 %v531_v31, %v529_v26 }
 0x158   : > { %v522_v40 = vadd.f32 %v1082_v34, %v521_v38 }
 0x15a   : > { %v1482_v45 = vsel %vm523_vm9, %v1082_v34, %v522_v40 }
 0x15f   : > { %533 = vadd.xlane.f32.xlu0 %v532_v32 }
 0x1ca   : > { %v517_v44 = vpop.xlane.xlu0 %516 }
 0x1cb   : > { %v525_v46 = vmul.f32 %v1482_v45, %v517_v44 }
 0x1cd   : > { %v536_v48 = vmul.f32 %v525_v46, %v525_v46 }
 0x1d2   : > { %v534_v47 = vpop.xlane.xlu0 %533 }
 0x1d3   : > { %v535_v49 = vmul.f32 %v534_v47, %v1482_v45 }
 0x1d5   : > { %v537_v50 = vsub.f32 %v535_v49, %v536_v48 }
 0x1d7   : > { %v538_v51 = vadd.f32 1e-05, %v537_v50 }
 0x1d9   : > { %1083 = vrsqrt.f32 %v538_v51  ;;  %vm545_vm11 = vweird.f32 %v538_v51 }
 0x1df   : > { %v1084_v52 = vpop.eup %1083 }
 0x1e0   : > { %v540_v53 = vmul.f32 %v1084_v52, %v538_v51  ;;  %vm546_vm10 = vweird.f32 %v1084_v52 }
 0x1e1   : > { %vm547_vm12 = vmor %vm545_vm11, %vm546_vm10 }
 0x1e2   : > { %v541_v56 = vmul.f32 %v1084_v52, %v540_v53 }
 0x1e4   : > { %v542_v57 = vmul.f32 0.5, %v541_v56 }
 0x1e6   : > { %v543_v58 = vsub.f32 1.5, %v542_v57 }
 0x1e8   : > { %v544_v59 = vmul.f32 %v1084_v52, %v543_v58 }
 0x1ea   : > { %v548_v61 = vsel %vm547_vm12, %v1084_v52, %v544_v59 }
 0x1eb   : > { %v550_v62 = vmul.f32 %v549_v60, %v548_v61 }
 0x1ed   : > { %553 = vperm.xlu1 %1079, %v550_v62   ;;  %v561_v3 = vmul.f32 %v550_v62, %v525_v46 }
 0x1ef   : > { %v562_v5 = vsub.f32 %v560_v4, %v561_v3 }
 0x1f5   : > { %565 = vperm.xlu1 %1079, %v562_v5  }
 0x25f   : > { %v554_v8 = vpop.permute.xlu1 %553 }
 0x260   : > { %v558_v9 = vmul.f32 %v554_v8, %v511_v0  ;;  %v559_v10 = vmul.f32 %v554_v8, %v512_v19  ;;  %v556_v22 = vmul.f32 %v554_v8, %v1472_v13  ;;  %v557_v0 = vmul.f32 %v554_v8, %v1474_v16 }
 0x267   : > { %v566_v11 = vpop.permute.xlu1 %565 }
 0x268   : > { %v570_v12 = vadd.f32 %v566_v11, %v558_v9  ;;  %v571_v1 = vadd.f32 %v566_v11, %v559_v10  ;;  %v568_v19 = vadd.f32 %v566_v11, %v556_v22  ;;  %v569_v23 = vadd.f32 %v566_v11, %v557_v0 }
 0x26a   : > { %v1492_v17 = vmax.f32 %v570_v12, 0.0  ;;  %v1494_v18 = vmax.f32 %v571_v1, 0.0  ;;  %v1504_v24 = vmax.f32 %v568_v19, 0.0  ;;  %v1506_v25 = vmax.f32 %v569_v23, 0.0 }
 0x26c   : > { %688 = vrot.lane.b32.xlu1 %v1494_v18, %s1232_s15  ;;  %686 = vrot.lane.b32.xlu0 %v1492_v17, %s1232_s15  ;;  %v734_v22 = vmul.f32 %v1492_v17, %v1419_v29 }
 0x26d   : > { %703 = vrot.lane.b32.xlu2 %v1492_v17, %s1233_s22 }
 0x274   : > { %669 = vrot.lane.b32.xlu1 %v1492_v17, %s1234_s27  ;;  %652 = vrot.lane.b32.xlu0 %v1492_v17, %s1235_s16 }
 0x275   : > { %705 = vrot.lane.b32.xlu2 %v1494_v18, %s1233_s22 }
 0x27c   : > { %684 = vrot.lane.b32.xlu0 %v1506_v25, %s1232_s15  ;;  %682 = vrot.lane.b32.xlu1 %v1504_v24, %s1232_s15 }
 0x27d   : > { %699 = vrot.lane.b32.xlu2 %v1504_v24, %s1233_s22 }
 0x284   : > { %636 = vrot.lane.b32.xlu0 %v1506_v25, %s1236_s17  ;;  %654 = vrot.lane.b32.xlu1 %v1494_v18, %s1235_s16 }
 0x285   : > { %671 = vrot.lane.b32.xlu2 %v1494_v18, %s1234_s27 }
 0x28c   : > { %619 = vrot.lane.b32.xlu0 %v1506_v25, %s1237_s19  ;;  %648 = vrot.lane.b32.xlu1 %v1504_v24, %s1235_s16 }
 0x28d   : > { %701 = vrot.lane.b32.xlu2 %v1506_v25, %s1233_s22 }
 0x294   : > { %602 = vrot.lane.b32.xlu0 %v1506_v25, %s1238_s30  ;;  %638 = vrot.lane.b32.xlu1 %v1492_v17, %s1236_s17 }
 0x295   : > { %665 = vrot.lane.b32.xlu2 %v1504_v24, %s1234_s27 }
 0x29c   : > { %634 = vrot.lane.b32.xlu0 %v1504_v24, %s1236_s17  ;;  %621 = vrot.lane.b32.xlu1 %v1492_v17, %s1237_s19 }
 0x29d   : > { %667 = vrot.lane.b32.xlu2 %v1506_v25, %s1234_s27 }
 0x2a4   : > { %597 = vrot.lane.b32.xlu0 %v1494_v18, %s1238_s30  ;;  %604 = vrot.lane.b32.xlu1 %v1492_v17, %s1238_s30 }
 0x2a5   : > { %650 = vrot.lane.b32.xlu2 %v1506_v25, %s1235_s16 }
 0x2ac   : > { %600 = vrot.lane.b32.xlu0 %v1504_v24, %s1238_s30  ;;  %585 = vrot.lane.b32.xlu1 %v1506_v25, %s1239_s20 }
 0x2ad   : > { %631 = vrot.lane.b32.xlu2 %v1494_v18, %s1236_s17 }
 0x2b4   : > { %617 = vrot.lane.b32.xlu1 %v1504_v24, %s1237_s19 }
 0x2b5   : > { %614 = vrot.lane.b32.xlu2 %v1494_v18, %s1237_s19 }
 0x2bc   : > { %583 = vrot.lane.b32.xlu1 %v1504_v24, %s1239_s20 }
 0x2bd   : > { %587 = vrot.lane.b32.xlu2 %v1492_v17, %s1239_s20  ;;  %v735_v17 = vmul.f32 %v1494_v18, %v1421_v30 }
 0x2c5   : > { %577 = vrot.lane.b32.xlu2 %v1494_v18, %s1239_s20 }
 0x2c7   : > { %v704_v13 = vpop.permute.xlu2 %703 }
 0x2cf   : > { %v706_v16 = vpop.permute.xlu2 %705 }
 0x2d0   : > { %v709_v26 = vsel %vm426_vm1, %v704_v13, %v706_v16 }
 0x2d1   : > { %v750_v31 = vmul.f32 %v709_v26, %v1391_v6 }
 0x2d3   : > { %803 = vmatpush.msra.mxu2 %v750_v31 }
 0x2d7   : > { %v700_v32 = vpop.permute.xlu2 %699 }
 0x2d8   : > { %v715_v33 = vsel %vm426_vm1, %v706_v16, %v700_v32 }
 0x2d9   : > { %v751_v34 = vmul.f32 %v715_v33, %v1393_v7  ;;  %v733_v33 = vmul.f32 %v1506_v25, %v1421_v30 }
 0x2db   : > { %823 = vmatpush.msra.mxu3 %v751_v34 }
 0x2de   : > { %v689_v35 = vpop.permute.xlu1 %688  ;;  %v687_v36 = vpop.permute.xlu0 %686 }
 0x2df   : > { %v672_v37 = vpop.permute.xlu2 %671  ;;  %v692_v38 = vsel %vm416_vm0, %v687_v36, %v689_v35 }
 0x2e0   : > { %v746_v40 = vmul.f32 %v692_v38, %v1399_v14 }
 0x2e2   : > { %804 = vmatpush.msra.mxu2 %v746_v40 }
 0x2e6   : > { %v670_v44 = vpop.permute.xlu1 %669  ;;  %v653_v46 = vpop.permute.xlu0 %652 }
 0x2e7   : > { %v702_v47 = vpop.permute.xlu2 %701  ;;  %v675_v48 = vsel %vm406_vm2, %v670_v44, %v672_v37 }
 0x2e8   : > { %v707_v49 = vsel %vm426_vm1, %v700_v32, %v702_v47  ;;  %v708_v50 = vsel %vm426_vm1, %v702_v47, %v704_v13  ;;  %v742_v51 = vmul.f32 %v675_v48, %v1407_v20  ;;  %v732_v32 = vmul.f32 %v1504_v24, %v1419_v29 }
 0x2e9   : > { %v748_v52 = vmul.f32 %v707_v49, %v1391_v6  ;;  %v749_v53 = vmul.f32 %v708_v50, %v1393_v7 }
 0x2ea   : > { %805 = vmatpush.msra.mxu2 %v742_v51 }
 0x2eb   : > { %763 = vmatpush.msra.mxu0 %v748_v52  ;;  %783 = vmatpush.msra.mxu1 %v749_v53 }
 0x2ee   : > { %v685_v56 = vpop.permute.xlu0 %684  ;;  %v683_v57 = vpop.permute.xlu1 %682 }
 0x2ef   : > { %v666_v58 = vpop.permute.xlu2 %665  ;;  %v690_v59 = vsel %vm416_vm0, %v683_v57, %v685_v56  ;;  %v691_v60 = vsel %vm416_vm0, %v685_v56, %v687_v36  ;;  %v698_v61 = vsel %vm416_vm0, %v689_v35, %v683_v57 }
 0x2f0   : > { %v744_v62 = vmul.f32 %v690_v59, %v1399_v14  ;;  %v745_v3 = vmul.f32 %v691_v60, %v1401_v15  ;;  %v747_v6 = vmul.f32 %v698_v61, %v1401_v15  ;;  %v681_v7 = vsel %vm406_vm2, %v672_v37, %v666_v58 }
 0x2f1   : > { %v743_v4 = vmul.f32 %v681_v7, %v1409_v21 }
 0x2f2   : > { %764 = vmatpush.msra.mxu0 %v744_v62  ;;  %784 = vmatpush.msra.mxu1 %v745_v3  ;;  %v752_v62 = vld [vmem:[%s1647_s5] sm:$0xff] }
 0x2f3   : > { %824 = vmatpush.msra.mxu3 %v747_v6 }
 0x2f5   : > { %825 = vmatpush.msra.mxu3 %v743_v4 }
 0x2f6   : > { %v637_v5 = vpop.permute.xlu0 %636  ;;  %v655_v8 = vpop.permute.xlu1 %654 }
 0x2f7   : > { %v668_v9 = vpop.permute.xlu2 %667  ;;  %v658_v10 = vsel %vm396_vm3, %v653_v46, %v655_v8 }
 0x2f8   : > { %v673_v11 = vsel %vm406_vm2, %v666_v58, %v668_v9  ;;  %v674_v14 = vsel %vm406_vm2, %v668_v9, %v670_v44  ;;  %v738_v12 = vmul.f32 %v658_v10, %v1415_v27 }
 0x2f9   : > { %v740_v15 = vmul.f32 %v673_v11, %v1407_v20  ;;  %v741_v1 = vmul.f32 %v674_v14, %v1409_v21 }
 0x2fa   : > { %806 = vmatpush.msra.mxu2 %v738_v12 }
 0x2fb   : > { %765 = vmatpush.msra.mxu0 %v740_v15  ;;  %785 = vmatpush.msra.mxu1 %v741_v1 }
 0x2fc   : > { %807 = vmatpush.msra.mxu2 %v734_v22 }
 0x2fe   : > { %v1562_v0 = vpop.permute.xlu0 %619  ;;  %v649_v19 = vpop.permute.xlu1 %648 }
 0x2ff   : > { %v651_v23 = vpop.permute.xlu2 %650  ;;  %v664_v13 = vsel %vm396_vm3, %v655_v8, %v649_v19 }
 0x300   : > { %v656_v16 = vsel %vm396_vm3, %v649_v19, %v651_v23  ;;  %v657_v26 = vsel %vm396_vm3, %v651_v23, %v653_v46  ;;  %v739_v20 = vmul.f32 %v664_v13, %v1417_v28 }
 0x301   : > { %v736_v21 = vmul.f32 %v656_v16, %v1415_v27  ;;  %v737_v31 = vmul.f32 %v657_v26, %v1417_v28 }
 0x302   : > { %826 = vmatpush.msra.mxu3 %v739_v20 }
 0x303   : > { %766 = vmatpush.msra.mxu0 %v736_v21  ;;  %786 = vmatpush.msra.mxu1 %v737_v31 }
 0x304   : > { %827 = vmatpush.msra.mxu3 %v735_v17 }
 0x305   : > { %767 = vmatpush.msra.mxu0 %v732_v32  ;;  %787 = vmatpush.msra.mxu1 %v733_v33 }
 0x306   : > { %v603_v34 = vpop.permute.xlu0 %602  ;;  %v639_v35 = vpop.permute.xlu1 %638 }
 0x307   : > { %v632_v27 = vpop.permute.xlu2 %631  ;;  %v641_v28 = vsel %vm387_vm4, %v637_v5, %v639_v35 }
 0x308   : > { %v730_v36 = vmul.f32 %v641_v28, %v1431_v39  ;;  %v642_v18 = vsel %vm387_vm4, %v639_v35, %v632_v27 }
 0x309   : > { %v731_v37 = vmul.f32 %v642_v18, %v1433_v41 }
 0x30a   : > { %808 = vmatpush.msra.mxu2 %v730_v36 }
 0x30b   : > { %828 = vmatpush.msra.mxu3 %v731_v37 }
 0x30e   : > { %v635_v29 = vpop.permute.xlu0 %634  ;;  %v622_v24 = vpop.permute.xlu1 %621 }
 0x30f   : > { %v615_v38 = vpop.permute.xlu2 %614  ;;  %v647_v30 = vsel %vm387_vm4, %v632_v27, %v635_v29  ;;  %v640_v25 = vsel %vm387_vm4, %v635_v29, %v637_v5  ;;  %v624_v40 = vsel %vm377_vm5, %v1562_v0, %v622_v24 }
 0x310   : > { %v728_v44 = vmul.f32 %v647_v30, %v1431_v39  ;;  %v729_v46 = vmul.f32 %v640_v25, %v1433_v41  ;;  %v726_v47 = vmul.f32 %v624_v40, %v1435_v42  ;;  %v625_v48 = vsel %vm377_vm5, %v622_v24, %v615_v38  ;;  %v865_v25 = vld [vmem:[%s1648_s6] sm:$0xff] }
 0x311   : > { %v727_v49 = vmul.f32 %v625_v48, %v1437_v43 }
 0x312   : > { %768 = vmatpush.msra.mxu0 %v728_v44  ;;  %788 = vmatpush.msra.mxu1 %v729_v46  ;;  %v876_v46 = vld [vmem:[%s1649_s7] sm:$0xff] }
 0x313   : > { %809 = vmatpush.msra.mxu2 %v726_v47  ;;  %829 = vmatpush.msra.mxu3 %v727_v49 }
 0x316   : > { %v598_v50 = vpop.permute.xlu0 %597  ;;  %v605_v51 = vpop.permute.xlu1 %604 }
 0x317   : > { %v588_v52 = vpop.permute.xlu2 %587  ;;  %v607_v53 = vsel %vm367_vm6, %v603_v34, %v605_v51  ;;  %v608_v56 = vsel %vm367_vm6, %v605_v51, %v598_v50 }
 0x318   : > { %v722_v39 = vmul.f32 %v607_v53, %v1447_v54  ;;  %v723_v41 = vmul.f32 %v608_v56, %v1449_v55  ;;  %v888_v53 = vld [vmem:[#allocation3] sm:$0xff]  ;;  %v889_v56 = vld [vmem:[#allocation3 + $0x8] sm:$0xff] }
 0x31a   : > { %810 = vmatpush.msra.mxu2 %v722_v39  ;;  %830 = vmatpush.msra.mxu3 %v723_v41  ;;  %v890_v39 = vld [vmem:[#allocation3 + $0x10] sm:$0xff]  ;;  %v891_v41 = vld [vmem:[#allocation3 + $0x18] sm:$0xff] }
 0x31e   : > { %v586_v57 = vpop.permute.xlu1 %585  ;;  %v601_v6 = vpop.permute.xlu0 %600 }
 0x31f   : > { %v578_v58 = vpop.permute.xlu2 %577  ;;  %v590_v59 = vsel %vm357_vm7, %v586_v57, %v588_v52  ;;  %v613_v8 = vsel %vm367_vm6, %v598_v50, %v601_v6  ;;  %v606_v9 = vsel %vm367_vm6, %v601_v6, %v603_v34 }
 0x320   : > { %v718_v60 = vmul.f32 %v590_v59, %v1456_v63  ;;  %v591_v61 = vsel %vm357_vm7, %v588_v52, %v578_v58  ;;  %v720_v14 = vmul.f32 %v613_v8, %v1447_v54  ;;  %v721_v12 = vmul.f32 %v606_v9, %v1449_v55 }
 0x321   : > { %v719_v3 = vmul.f32 %v591_v61, %v1458_v2 }
 0x322   : > { %811 = vmatpush.msra.mxu2 %v718_v60 }
 0x323   : > { %831 = vmatpush.msra.mxu3 %v719_v3  ;;  %995 = vmatmul.msk.f32.vlgmr.msra.gmra.mxu2 %vm451_vm8, %v752_v62 }
 0x324   : > { %996 = vmatmul.msk.f32.vlgmr.msra.gmra.mxu3 %vm451_vm8, %v752_v62 }
 0x326   : > { %v618_v7 = vpop.permute.xlu1 %617 }
 0x327   : > { %v630_v4 = vsel %vm377_vm5, %v615_v38, %v618_v7  ;;  %v623_v5 = vsel %vm377_vm5, %v618_v7, %v1562_v0 }
 0x328   : > { %v724_v10 = vmul.f32 %v630_v4, %v1435_v42  ;;  %v725_v11 = vmul.f32 %v623_v5, %v1437_v43 }
 0x32a   : > { %769 = vmatpush.msra.mxu0 %v724_v10  ;;  %789 = vmatpush.msra.mxu1 %v725_v11 }
 0x32c   : > { %770 = vmatpush.msra.mxu0 %v720_v14  ;;  %790 = vmatpush.msra.mxu1 %v721_v12 }
 0x32e   : > { %v584_v15 = vpop.permute.xlu1 %583 }
 0x32f   : > { %v596_v1 = vsel %vm357_vm7, %v578_v58, %v584_v15  ;;  %v589_v22 = vsel %vm357_vm7, %v584_v15, %v586_v57 }
 0x330   : > { %v716_v0 = vmul.f32 %v596_v1, %v1456_v63  ;;  %v717_v19 = vmul.f32 %v589_v22, %v1458_v2 }
 0x332   : > { %771 = vmatpush.msra.mxu0 %v716_v0  ;;  %791 = vmatpush.msra.mxu1 %v717_v19 }
 0x333   : > { %993 = vmatmul.msk.f32.vlgmr.msra.gmra.mxu0 %vm451_vm8, %v752_v62  ;;  %994 = vmatmul.msk.f32.vlgmr.msra.gmra.mxu1 %vm451_vm8, %v752_v62 }
 0x3a6   : > { %v813_v42 = vpop.f32.mrf.mxu2 }
 0x3a7   : > { %v833_v43 = vpop.f32.mrf.mxu3  ;;  %v844_v26 = vmul.f32 %v813_v42, %v813_v42 }
 0x3a8   : > { %v845_v31 = vmul.f32 %v833_v43, %v833_v43 }
 0x3b0   : > { %v773_v54 = vpop.f32.mrf.mxu0  ;;  %v793_v55 = vpop.f32.mrf.mxu1 }
 0x3b1   : > { %v842_v23 = vmul.f32 %v773_v54, %v773_v54  ;;  %v836_v13 = vadd.f32 %v793_v55, %v773_v54  ;;  %v843_v16 = vmul.f32 %v793_v55, %v793_v55 }
 0x3b3   : > { %v846_v20 = vadd.f32 %v843_v16, %v842_v23  ;;  %v837_v21 = vadd.f32 %v836_v13, %v813_v42 }
 0x3b5   : > { %v838_v63 = vadd.f32 %v837_v21, %v833_v43  ;;  %v847_v17 = vadd.f32 %v846_v20, %v844_v26 }
 0x3b7   : > { %839 = vadd.xlane.f32.xlu2 %v838_v63  ;;  %v848_v2 = vadd.f32 %v847_v17, %v845_v31 }
 0x3b9   : > { %849 = vadd.xlane.f32.xlu0 %v848_v2 }
 0x42a   : > { %v840_v32 = vpop.xlane.xlu2 %839 }
 0x42b   : > { %v841_v33 = vmul.f32 %v840_v32, %v1482_v45 }
 0x42c   : > { %v850_v34 = vpop.xlane.xlu0 %849 }
 0x42d   : > { %v852_v35 = vmul.f32 %v841_v33, %v841_v33  ;;  %v851_v27 = vmul.f32 %v850_v34, %v1482_v45 }
 0x42f   : > { %v853_v28 = vsub.f32 %v851_v27, %v852_v35 }
 0x431   : > { %v854_v36 = vadd.f32 1e-05, %v853_v28 }
 0x433   : > { %1085 = vrsqrt.f32 %v854_v36  ;;  %vm861_vm14 = vweird.f32 %v854_v36 }
 0x439   : > { %v1086_v18 = vpop.eup %1085 }
 0x43a   : > { %v856_v37 = vmul.f32 %v1086_v18, %v854_v36  ;;  %vm862_vm13 = vweird.f32 %v1086_v18 }
 0x43b   : > { %vm863_vm15 = vmor %vm861_vm14, %vm862_vm13 }
 0x43c   : > { %v857_v29 = vmul.f32 %v1086_v18, %v856_v37 }
 0x43e   : > { %v858_v24 = vmul.f32 0.5, %v857_v29 }
 0x440   : > { %v859_v38 = vsub.f32 1.5, %v858_v24 }
 0x442   : > { %v860_v30 = vmul.f32 %v1086_v18, %v859_v38 }
 0x444   : > { %v864_v40 = vsel %vm863_vm15, %v1086_v18, %v860_v30 }
 0x445   : > { %v866_v44 = vmul.f32 %v865_v25, %v864_v40 }
 0x447   : > { %869 = vperm.xlu1 %1079, %v866_v44   ;;  %v877_v45 = vmul.f32 %v866_v44, %v841_v33 }
 0x449   : > { %v878_v47 = vsub.f32 %v876_v46, %v877_v45 }
 0x44f   : > { %881 = vperm.xlu1 %1079, %v878_v47  }
 0x4b9   : > { %v870_v48 = vpop.permute.xlu1 %869 }
 0x4ba   : > { %v872_v49 = vmul.f32 %v870_v48, %v773_v54  ;;  %v873_v50 = vmul.f32 %v870_v48, %v793_v55  ;;  %v874_v51 = vmul.f32 %v870_v48, %v813_v42  ;;  %v875_v52 = vmul.f32 %v870_v48, %v833_v43 }
 0x4c1   : > { %v882_v57 = vpop.permute.xlu1 %881 }
 0x4c2   : > { %v884_v58 = vadd.f32 %v882_v57, %v872_v49  ;;  %v885_v59 = vadd.f32 %v882_v57, %v873_v50  ;;  %v886_v60 = vadd.f32 %v882_v57, %v874_v51  ;;  %v887_v61 = vadd.f32 %v882_v57, %v875_v52 }
 0x4c4   : > { %v892_v62 = vadd.f32 %v888_v53, %v884_v58  ;;  %v893_v3 = vadd.f32 %v889_v56, %v885_v59  ;;  %v894_v6 = vadd.f32 %v890_v39, %v886_v60  ;;  %v895_v7 = vadd.f32 %v891_v41, %v887_v61 }
 0x4c6   : > { %v896_v4 = vmax.f32 %v892_v62, 0.0  ;;  %v897_v5 = vmax.f32 %v893_v3, 0.0  ;;  %v898_v8 = vmax.f32 %v894_v6, 0.0  ;;  %v899_v9 = vmax.f32 %v895_v7, 0.0 }
 0x4c8   : > { %900 = vst [vmem:[#allocation9] sm:$0xff] %v896_v4 }
 0x4c9   : > { %901 = vst [vmem:[#allocation9 + $0x8] sm:$0xff] %v897_v5 }
 0x4ca   : > { %902 = vst [vmem:[#allocation9 + $0x10] sm:$0xff] %v898_v8 }
 0x4cb   : > { %903 = vst [vmem:[#allocation9 + $0x18] sm:$0xff] %v899_v9 }
 0x4cc PF: > { %p1023_p3 = scmp.eq.s32.totalorder %s1308_s12, 1  ;;  %s1240_s11 = smov [#allocation9]  }
 0x4cd   : > { %s910_s13 = sshll.u32 %s1240_s11, 4  ;;  %s912_s22 = sshll.u32 %s1650_s8, 4  ;;  %s911_s13 = int_to_ptr.vmem [resolvable:$true] %s910_s13  ;;  %s913_s22 = int_to_ptr.hbm [resolvable:$true] %s912_s22 }
 0x4ce   : > { %1009 = dma.vmem_to_hbm [thread:$0]  (%p1023_p3), %s911_s13, 512, %s913_s22, [#allocation6]  }
 0x4cf   : > { %1200 = dma.done.wait (%p1023_p3), [#allocation6], 512  }
 0x4d0   : > { %1202 = vsyncadd (%p1023_p3), [#allocation6], 4294966784 }
 0x4d1 PF: > { %p20_p10 = scmp.ge.s32.totalorder %s1322_s18, 4   ;;  %s1654_s27 = smov %s1209_s28 }
 0x4d2   : > { %s1655_s28 = smov %s1213_s29  ;;  %s1656_s29 = smov %s1332_s21 }
 0x4d3   : > { %s1657_s30 = smov %s1322_s18  ;;  %22 = sbr.rel (!%p20_p10) target bundleno = 5 (0x5), region = 99 }
 0x4d8   :  { %926 = vsyncpa [#allocation5], 1 }
 0x4d9   :  { %928 = vsyncpa [#allocation5 + $0x1], 1 }
 0x4da   :  { %929 = vsyncpa [#allocation8], 1 }
 0x4db   :  { %930 = vsyncpa [#allocation6], 1 }
 0x4dc   :  { %932 = vsyncpa [#allocation6 + $0x1], 1 }

</bundles_post_ra>
